<compile_context>
chip_gen: v7x
topology: tpu7x:2x2x1
jax: 0.10.0
libtpu: 0.0.40
codegen_flags: <defaults>
</compile_context>

<pallas_src>
import jax
import jax.numpy as jnp
from jax.experimental import pallas as pl
from jax.experimental.pallas import tpu as pltpu


def _round_up(x, m):
    return ((x + m - 1) // m) * m


def mlp_kernel(x_ref, w1_ref, b1_ref, w2_ref, b2_ref,
               w3_ref, b3_ref, w4_ref, b4_ref, o_ref):
    # In-kernel bf16 cast of the streamed f32 x tile (replaces a wrapper-side
    # cast+pad pass over x in HBM).
    x = x_ref[...].astype(jnp.bfloat16)

    # Hoist bias loads once.
    b1 = b1_ref[...]
    b2 = b2_ref[...]
    b3 = b3_ref[...]
    b4 = b4_ref[...]

    # bf16 MXU operands, f32 accumulation; bias-add / ReLU in f32 on the VPU.
    h = jnp.dot(x, w1_ref[...], preferred_element_type=jnp.float32)
    h = jnp.maximum(h + b1, 0.0).astype(jnp.bfloat16)

    h = jnp.dot(h, w2_ref[...], preferred_element_type=jnp.float32)
    h = jnp.maximum(h + b2, 0.0).astype(jnp.bfloat16)

    h = jnp.dot(h, w3_ref[...], preferred_element_type=jnp.float32)
    h = jnp.maximum(h + b3, 0.0).astype(jnp.bfloat16)

    # Output logits (forward() returns pre-softmax logits). Narrow f32 store:
    # o_ref last dim == n_states == full array dim.
    o_ref[...] = jnp.dot(h, w4_ref[...], preferred_element_type=jnp.float32) + b4


def testnet_forward(x, params):
    """x: (B, n_features) float32. params: f32 dict of (in,out) weights, (1,out) biases."""
    B, n_features = x.shape
    n_states = params["w4"].shape[1]

    # ---- batch tiling ----
    # Large tiles amortize per-step overhead; cap at half the batch (rounded to a
    # multiple of 8) so there are >= 2 grid steps for v7x megacore whenever B
    # allows it.  Intermediates at TM=2048 (f32 (2048,128) etc.) stay far inside
    # the 32 MiB scoped VMEM limit even on v7x's 64 MiB VMEM.
    TM_TARGET = 2048
    if B <= 16:
        TM = B                                    # one block; block dim == array dim
    else:
        half = _round_up(pl.cdiv(B, 2), 8)
        TM = max(8, min(TM_TARGET, half))
    grid = (pl.cdiv(B, TM),)

    # Weights cast to bf16 once (MXU-native, ~70 KB total); biases stay f32.
    w1 = params["w1"].astype(jnp.bfloat16)
    w2 = params["w2"].astype(jnp.bfloat16)
    w3 = params["w3"].astype(jnp.bfloat16)
    w4 = params["w4"].astype(jnp.bfloat16)
    b1 = params["b1"].astype(jnp.float32)
    b2 = params["b2"].astype(jnp.float32)
    b3 = params["b3"].astype(jnp.float32)
    b4 = params["b4"].astype(jnp.float32)

    def resident(shape):
        # Same block index every grid step -> DMA'd once, stays VMEM-resident.
        return pl.BlockSpec(shape, lambda i: (0, 0))

    in_specs = [
        pl.BlockSpec((TM, n_features), lambda i: (i, 0)),   # streamed f32 x tile
        resident(w1.shape), resident(b1.shape),
        resident(w2.shape), resident(b2.shape),
        resident(w3.shape), resident(b3.shape),
        resident(w4.shape), resident(b4.shape),
    ]
    out_specs = pl.BlockSpec((TM, n_states), lambda i: (i, 0))

    h1, h2, h3 = params["w1"].shape[1], params["w2"].shape[1], params["w3"].shape[1]
    flops = 2 * B * (n_features * h1 + h1 * h2 + h2 * h3 + h3 * n_states)
    weight_bytes = sum(int(a.size) * a.dtype.itemsize
                       for a in (w1, b1, w2, b2, w3, b3, w4, b4))
    bytes_accessed = (int(x.size) * 4          # f32 x read
                      + B * n_states * 4       # narrow f32 output write
                      + weight_bytes)

    out = pl.pallas_call(
        mlp_kernel,
        out_shape=jax.ShapeDtypeStruct((B, n_states), jnp.float32),
        grid=grid,
        in_specs=in_specs,
        out_specs=out_specs,
        compiler_params=pltpu.CompilerParams(
            dimension_semantics=("parallel",),          # megacore on v7x
            vmem_limit_bytes=32 * 1024 * 1024,          # raise v5e's 16 MiB default
        ),
        cost_estimate=pl.CostEstimate(
            flops=flops, transcendentals=0, bytes_accessed=bytes_accessed),
    )(x, w1, b1, w2, b2, w3, b3, w4, b4)

    return out


def init_params(key, n_features, n_states, n_hidden_1=128, n_hidden_2=64):
    """Deterministic init mimicking PyTorch Linear default (uniform +/- 1/sqrt(fan_in)).
    Weights stored transposed as (in, out); biases as (1, out)."""
    n_hidden_3 = n_hidden_2 // 2
    dims = [(n_features, n_hidden_1),
            (n_hidden_1, n_hidden_2),
            (n_hidden_2, n_hidden_3),
            (n_hidden_3, n_states)]
    params = {}
    for i, (fan_in, fan_out) in enumerate(dims, start=1):
        key, kw, kb = jax.random.split(key, 3)
        bound = 1.0 / (fan_in ** 0.5)
        params[f"w{i}"] = jax.random.uniform(
            kw, (fan_in, fan_out), jnp.float32, minval=-bound, maxval=bound)
        params[f"b{i}"] = jax.random.uniform(
            kb, (1, fan_out), jnp.float32, minval=-bound, maxval=bound)
    return params


def reference_forward(x, params):
    h = jnp.maximum(x @ params["w1"] + params["b1"], 0.0)
    h = jnp.maximum(h @ params["w2"] + params["b2"], 0.0)
    h = jnp.maximum(h @ params["w3"] + params["b3"], 0.0)
    return h @ params["w4"] + params["b4"]


if __name__ == "__main__":
    key = jax.random.PRNGKey(0)
    batch, n_features, n_states = 8, 32, 4

    kx, kp = jax.random.split(key)
    x = jax.random.normal(kx, (batch, n_features), jnp.float32)
    params = init_params(kp, n_features, n_states)

    out = jax.block_until_ready(testnet_forward(x, params))
    ref = reference_forward(x, params)

    assert out.shape == (batch, n_states)
    # bf16 MXU operands with f32 accumulation -> loosened tolerance vs f32 reference.
    assert jnp.allclose(out, ref, atol=3e-2, rtol=3e-2), float(jnp.max(jnp.abs(out - ref)))
    print("KERNEL_OK")
</pallas_src>

<mosaic_0001>
module attributes {stable_mosaic.version = 11 : i64} {
  func.func @mlp_kernel(%arg0: i32, %arg1: memref<8x32xf32, #tpu.memory_space<vmem>>, %arg2: memref<32x128xbf16, #tpu.memory_space<vmem>>, %arg3: memref<1x128xf32, #tpu.memory_space<vmem>>, %arg4: memref<128x64xbf16, #tpu.memory_space<vmem>>, %arg5: memref<1x64xf32, #tpu.memory_space<vmem>>, %arg6: memref<64x32xbf16, #tpu.memory_space<vmem>>, %arg7: memref<1x32xf32, #tpu.memory_space<vmem>>, %arg8: memref<32x4xbf16, #tpu.memory_space<vmem>>, %arg9: memref<1x4xf32, #tpu.memory_space<vmem>>, %arg10: memref<8x4xf32, #tpu.memory_space<vmem>>) attributes {dimension_semantics = [#tpu.dimension_semantics<parallel>], iteration_bounds = array<i64: 1>, scalar_prefetch = 0 : i64, scratch_operands = 0 : i64, tpu.core_type = #tpu.core_type<tc>, window_params = [{transform_indices = @transform_0, window_bounds = array<i64: 8, 32>}, {pipeline_mode = #tpu.pipeline_mode<synchronous>, transform_indices = @transform_1, window_bounds = array<i64: 32, 128>}, {pipeline_mode = #tpu.pipeline_mode<synchronous>, transform_indices = @transform_2, window_bounds = array<i64: 1, 128>}, {pipeline_mode = #tpu.pipeline_mode<synchronous>, transform_indices = @transform_3, window_bounds = array<i64: 128, 64>}, {pipeline_mode = #tpu.pipeline_mode<synchronous>, transform_indices = @transform_4, window_bounds = array<i64: 1, 64>}, {pipeline_mode = #tpu.pipeline_mode<synchronous>, transform_indices = @transform_5, window_bounds = array<i64: 64, 32>}, {pipeline_mode = #tpu.pipeline_mode<synchronous>, transform_indices = @transform_6, window_bounds = array<i64: 1, 32>}, {pipeline_mode = #tpu.pipeline_mode<synchronous>, transform_indices = @transform_7, window_bounds = array<i64: 32, 4>}, {pipeline_mode = #tpu.pipeline_mode<synchronous>, transform_indices = @transform_8, window_bounds = array<i64: 1, 4>}, {transform_indices = @transform_9, window_bounds = array<i64: 8, 4>}]} {
    %c0 = arith.constant 0 : index
    %c0_0 = arith.constant 0 : index
    %0 = vector.load %arg1[%c0, %c0_0] : memref<8x32xf32, #tpu.memory_space<vmem>>, vector<8x32xf32>
    %1 = arith.truncf %0 : vector<8x32xf32> to vector<8x32xbf16>
    %c0_1 = arith.constant 0 : index
    %c0_2 = arith.constant 0 : index
    %2 = vector.load %arg3[%c0_1, %c0_2] : memref<1x128xf32, #tpu.memory_space<vmem>>, vector<1x128xf32>
    %c0_3 = arith.constant 0 : index
    %c0_4 = arith.constant 0 : index
    %3 = vector.load %arg5[%c0_3, %c0_4] : memref<1x64xf32, #tpu.memory_space<vmem>>, vector<1x64xf32>
    %c0_5 = arith.constant 0 : index
    %c0_6 = arith.constant 0 : index
    %4 = vector.load %arg7[%c0_5, %c0_6] : memref<1x32xf32, #tpu.memory_space<vmem>>, vector<1x32xf32>
    %c0_7 = arith.constant 0 : index
    %c0_8 = arith.constant 0 : index
    %5 = vector.load %arg9[%c0_7, %c0_8] : memref<1x4xf32, #tpu.memory_space<vmem>>, vector<1x4xf32>
    %c0_9 = arith.constant 0 : index
    %c0_10 = arith.constant 0 : index
    %6 = vector.load %arg2[%c0_9, %c0_10] : memref<32x128xbf16, #tpu.memory_space<vmem>>, vector<32x128xbf16>
    %cst = arith.constant dense<0.000000e+00> : vector<8x128xf32>
    %7 = tpu.matmul %1, %6, %cst {dimension_numbers = #tpu.dot_dimension_numbers<[1], [0], [0], [1], [0, 0, 1, 1], [], []>} : vector<8x32xbf16>, vector<32x128xbf16>, vector<8x128xf32> -> vector<8x128xf32>
    %8 = vector.broadcast %2 : vector<1x128xf32> to vector<8x128xf32>
    %9 = arith.addf %7, %8 : vector<8x128xf32>
    %cst_11 = arith.constant 0.000000e+00 : f32
    %10 = vector.broadcast %cst_11 : f32 to vector<8x128xf32>
    %11 = arith.maximumf %9, %10 : vector<8x128xf32>
    %12 = arith.truncf %11 : vector<8x128xf32> to vector<8x128xbf16>
    %c0_12 = arith.constant 0 : index
    %c0_13 = arith.constant 0 : index
    %13 = vector.load %arg4[%c0_12, %c0_13] : memref<128x64xbf16, #tpu.memory_space<vmem>>, vector<128x64xbf16>
    %cst_14 = arith.constant dense<0.000000e+00> : vector<8x64xf32>
    %14 = tpu.matmul %12, %13, %cst_14 {dimension_numbers = #tpu.dot_dimension_numbers<[1], [0], [0], [1], [0, 0, 1, 1], [], []>} : vector<8x128xbf16>, vector<128x64xbf16>, vector<8x64xf32> -> vector<8x64xf32>
    %15 = vector.broadcast %3 : vector<1x64xf32> to vector<8x64xf32>
    %16 = arith.addf %14, %15 : vector<8x64xf32>
    %cst_15 = arith.constant 0.000000e+00 : f32
    %17 = vector.broadcast %cst_15 : f32 to vector<8x64xf32>
    %18 = arith.maximumf %16, %17 : vector<8x64xf32>
    %19 = arith.truncf %18 : vector<8x64xf32> to vector<8x64xbf16>
    %c0_16 = arith.constant 0 : index
    %c0_17 = arith.constant 0 : index
    %20 = vector.load %arg6[%c0_16, %c0_17] : memref<64x32xbf16, #tpu.memory_space<vmem>>, vector<64x32xbf16>
    %cst_18 = arith.constant dense<0.000000e+00> : vector<8x32xf32>
    %21 = tpu.matmul %19, %20, %cst_18 {dimension_numbers = #tpu.dot_dimension_numbers<[1], [0], [0], [1], [0, 0, 1, 1], [], []>} : vector<8x64xbf16>, vector<64x32xbf16>, vector<8x32xf32> -> vector<8x32xf32>
    %22 = vector.broadcast %4 : vector<1x32xf32> to vector<8x32xf32>
    %23 = arith.addf %21, %22 : vector<8x32xf32>
    %cst_19 = arith.constant 0.000000e+00 : f32
    %24 = vector.broadcast %cst_19 : f32 to vector<8x32xf32>
    %25 = arith.maximumf %23, %24 : vector<8x32xf32>
    %26 = arith.truncf %25 : vector<8x32xf32> to vector<8x32xbf16>
    %c0_20 = arith.constant 0 : index
    %c0_21 = arith.constant 0 : index
    %27 = vector.load %arg8[%c0_20, %c0_21] : memref<32x4xbf16, #tpu.memory_space<vmem>>, vector<32x4xbf16>
    %cst_22 = arith.constant dense<0.000000e+00> : vector<8x4xf32>
    %28 = tpu.matmul %26, %27, %cst_22 {dimension_numbers = #tpu.dot_dimension_numbers<[1], [0], [0], [1], [0, 0, 1, 1], [], []>} : vector<8x32xbf16>, vector<32x4xbf16>, vector<8x4xf32> -> vector<8x4xf32>
    %29 = vector.broadcast %5 : vector<1x4xf32> to vector<8x4xf32>
    %30 = arith.addf %28, %29 : vector<8x4xf32>
    %c0_23 = arith.constant 0 : index
    %c0_24 = arith.constant 0 : index
    %31 = vector.load %arg10[%c0_23, %c0_24] : memref<8x4xf32, #tpu.memory_space<vmem>>, vector<8x4xf32>
    tpu.vector_store %arg10[%c0_23, %c0_24], %30 {strides = array<i32>} : memref<8x4xf32, #tpu.memory_space<vmem>>, vector<8x4xf32>,
    return
  }
  func.func @transform_0(%arg0: i32) -> (i32, i32) {
    %c0_i32 = arith.constant 0 : i32
    %c0_i32_0 = arith.constant 0 : i32
    return %arg0, %c0_i32 : i32, i32
  }
  func.func @transform_1(%arg0: i32) -> (i32, i32) {
    %c0_i32 = arith.constant 0 : i32
    %c0_i32_0 = arith.constant 0 : i32
    %c0_i32_1 = arith.constant 0 : i32
    return %c0_i32, %c0_i32_0 : i32, i32
  }
  func.func @transform_2(%arg0: i32) -> (i32, i32) {
    %c0_i32 = arith.constant 0 : i32
    %c0_i32_0 = arith.constant 0 : i32
    %c0_i32_1 = arith.constant 0 : i32
    return %c0_i32, %c0_i32_0 : i32, i32
  }
  func.func @transform_3(%arg0: i32) -> (i32, i32) {
    %c0_i32 = arith.constant 0 : i32
    %c0_i32_0 = arith.constant 0 : i32
    %c0_i32_1 = arith.constant 0 : i32
    return %c0_i32, %c0_i32_0 : i32, i32
  }
  func.func @transform_4(%arg0: i32) -> (i32, i32) {
    %c0_i32 = arith.constant 0 : i32
    %c0_i32_0 = arith.constant 0 : i32
    %c0_i32_1 = arith.constant 0 : i32
    return %c0_i32, %c0_i32_0 : i32, i32
  }
  func.func @transform_5(%arg0: i32) -> (i32, i32) {
    %c0_i32 = arith.constant 0 : i32
    %c0_i32_0 = arith.constant 0 : i32
    %c0_i32_1 = arith.constant 0 : i32
    return %c0_i32, %c0_i32_0 : i32, i32
  }
  func.func @transform_6(%arg0: i32) -> (i32, i32) {
    %c0_i32 = arith.constant 0 : i32
    %c0_i32_0 = arith.constant 0 : i32
    %c0_i32_1 = arith.constant 0 : i32
    return %c0_i32, %c0_i32_0 : i32, i32
  }
  func.func @transform_7(%arg0: i32) -> (i32, i32) {
    %c0_i32 = arith.constant 0 : i32
    %c0_i32_0 = arith.constant 0 : i32
    %c0_i32_1 = arith.constant 0 : i32
    return %c0_i32, %c0_i32_0 : i32, i32
  }
  func.func @transform_8(%arg0: i32) -> (i32, i32) {
    %c0_i32 = arith.constant 0 : i32
    %c0_i32_0 = arith.constant 0 : i32
    %c0_i32_1 = arith.constant 0 : i32
    return %c0_i32, %c0_i32_0 : i32, i32
  }
  func.func @transform_9(%arg0: i32) -> (i32, i32) {
    %c0_i32 = arith.constant 0 : i32
    %c0_i32_0 = arith.constant 0 : i32
    return %arg0, %c0_i32 : i32, i32
  }
}

</mosaic_0001>

<bundles_post_ra>
// kernel: tpu_custom_call.1
= control target key start
LH: loop header
LB: loop body
LE: loop exit
PB: predicated region body
PF: predicated region fallthrough
CT: control target
= control target key end

     0   :  { %v483_v0 = vmov 0.0   ;;  %vm484_vm0 = vmmov 0   ;;  %vm61_vm1 = vcmask 261120   ;;  %vm257_vm2 = vcmask 523264   ;;  %s627_s1 = inlined_call_operand.vmem [shape: bf16[32,128], index: 1, kind: input, shape index: {}]   ;;  %s628_s0 = inlined_call_operand.vmem [shape: f32[8,32], index: 0, kind: input, shape index: {}]   ;;  %s629_s3 = inlined_call_operand.vmem [shape: bf16[128,64], index: 3, kind: input, shape index: {}]   ;;  %s630_s5 = inlined_call_operand.vmem [shape: bf16[64,32], index: 5, kind: input, shape index: {}]   ;;  %s631_s2 = inlined_call_operand.vmem [shape: f32[1,128], index: 2, kind: input, shape index: {}]   ;;  %s632_s7 = inlined_call_operand.vmem [shape: bf16[32,4], index: 7, kind: input, shape index: {}]   ;;  %s633_s4 = inlined_call_operand.vmem [shape: f32[1,64], index: 4, kind: input, shape index: {}]   ;;  %s634_s6 = inlined_call_operand.vmem [shape: f32[1,32], index: 6, kind: input, shape index: {}]   ;;  %s635_s8 = inlined_call_operand.vmem [shape: f32[1,4], index: 8, kind: input, shape index: {}]   ;;  %s636_s9 = inlined_call_operand.vmem [shape: f32[8,4], index: 9, kind: output, shape index: {}]  }
   0x1   :  { %417 = vmatprep.subr.bf16.mxu0 %v483_v0  ;;  %v467_v1 = vld [vmem:[%s627_s1] sm:$0xff]   ;;  %421 = vmatprep.mubr.msk.bf16.mxu0 %vm484_vm0, %v483_v0  ;;  %v468_v2 = vld [vmem:[%s627_s1 + $0x8] sm:$0xff]   ;;  %v471_v7 = vld [vmem:[%s629_s3 + $0x10] sm:$0xff]   ;;  %vm368_vm3 = vcmask 31744  }
   0x2   :  { %425 = vmatprep.subr.bf16.mxu1 %v483_v0  ;;  %441 = vmatprep.mubr.msk.bf16.mxu1 %vm484_vm0, %v483_v0  ;;  %v33_v3 = vld [vmem:[%s628_s0] sm:$0xff]  ;;  %v470_v6 = vld [vmem:[%s629_s3 + $0x8] sm:$0xff]   ;;  %v472_v8 = vld [vmem:[%s629_s3 + $0x18] sm:$0xff]  }
   0x3   :  { %418 = vmatpush3.bf16.msra.mxu0 %v467_v1  ;;  %v469_v4 = vld [vmem:[%s629_s3] sm:$0xff]   ;;  %v34_v5 = vpack.c.bf16 %v33_v3, %v33_v3  ;;  %v474_v10 = vld [vmem:[%s629_s3 + $0x28] sm:$0xff]   ;;  %v475_v11 = vld [vmem:[%s629_s3 + $0x30] sm:$0xff]  }
   0x4   :  { %419 = vmatprep.subr.bf16.mxu0 %v483_v0  ;;  %426 = vmatpush3.bf16.msra.mxu1 %v469_v4  ;;  %v473_v9 = vld [vmem:[%s629_s3 + $0x20] sm:$0xff]   ;;  %v476_v12 = vld [vmem:[%s629_s3 + $0x38] sm:$0xff]   ;;  %v478_v14 = vld [vmem:[%s630_s5 + $0x8] sm:$0xff]  }
   0x5   :  { %427 = vmatprep.subr.bf16.mxu1 %v483_v0  ;;  %v477_v13 = vld [vmem:[%s630_s5] sm:$0xff]   ;;  %v479_v23 = vld [vmem:[%s630_s5 + $0x10] sm:$0xff]   ;;  %v480_v24 = vld [vmem:[%s630_s5 + $0x18] sm:$0xff]  }
   0x6   :  { %v374_v15 = vld [vmem:[%s631_s2] ss:$0 sm:$0xff]  ;;  %v482_v34 = vld [vmem:[%s632_s7 + $0x8] sm:$0xff]  }
   0x7   :  { %420 = vmatpush3.bf16.msra.mxu0 %v468_v2  ;;  %v378_v25 = vld [vmem:[%s633_s4] ss:$0 sm:$0xff] }
   0x8   :  { %445 = vmatprep.subr.bf16.mxu0 %v483_v0  ;;  %428 = vmatpush3.bf16.msra.mxu1 %v470_v6  ;;  %v481_v32 = vld [vmem:[%s632_s7] sm:$0xff]  }
   0x9   :  { %429 = vmatprep.subr.bf16.mxu1 %v483_v0  ;;  %v387_v35 = vld [vmem:[%s634_s6] ss:$0 sm:$0xff] }
   0xa   :  { %422 = vmatmul.mubr.msk.bf16.vlgmr.msra.gmra.mrb[0].mxu0 %vm61_vm1, %v34_v5  ;;  %v393_v43 = vld [vmem:[%s635_s8] ss:$0 sm:$0xff] }
   0xb   :  { %453 = vmatprep.mubr.msk.bf16.mxu0 %vm484_vm0, %v483_v0  ;;  %446 = vmatpush3.bf16.msra.mxu0 %v477_v13 }
   0xc   :  { %430 = vmatpush3.bf16.msra.mxu1 %v471_v7  ;;  %447 = vmatprep.subr.bf16.mxu0 %v483_v0 }
   0xd   :  { %431 = vmatprep.subr.bf16.mxu1 %v483_v0 }
   0xf   :  { %448 = vmatpush3.bf16.msra.mxu0 %v478_v14 }
  0x10   :  { %432 = vmatpush3.bf16.msra.mxu1 %v472_v8  ;;  %449 = vmatprep.subr.bf16.mxu0 %v483_v0 }
  0x11   :  { %433 = vmatprep.subr.bf16.mxu1 %v483_v0 }
  0x13   :  { %450 = vmatpush3.bf16.msra.mxu0 %v479_v23 }
  0x14   :  { %434 = vmatpush3.bf16.msra.mxu1 %v473_v9  ;;  %451 = vmatprep.subr.bf16.mxu0 %v483_v0 }
  0x15   :  { %435 = vmatprep.subr.bf16.mxu1 %v483_v0 }
  0x17   :  { %452 = vmatpush3.bf16.msra.mxu0 %v480_v24 }
  0x18   :  { %436 = vmatpush3.bf16.msra.mxu1 %v474_v10  ;;  %457 = vmatprep.subr.bf16.mxu0 %v483_v0 }
  0x19   :  { %437 = vmatprep.subr.bf16.mxu1 %v483_v0 }
  0x1c   :  { %438 = vmatpush3.bf16.msra.mxu1 %v475_v11 }
  0x1d   :  { %439 = vmatprep.subr.bf16.mxu1 %v483_v0 }
  0x20   :  { %440 = vmatpush3.bf16.msra.mxu1 %v476_v12 }
  0xdd   :  { %v99_v16 = vpop.f32.mrb[0].mxu0 }
  0xde   :  { %v100_v17 = vadd.f32 %v374_v15, %v99_v16  ;;  %v423_v18 = vpop.f32.mrb[1].mxu0 }
  0xdf   :  { %v102_v19 = vpop.f32.mrb[2].mxu0 }
  0xe0   :  { %v105_v20 = vmax.f32 %v100_v17, 0.0  ;;  %v424_v21 = vpop.f32.mrb[3].mxu0 }
  0xe2   :  { %v106_v22 = vpack.c.bf16 %v105_v20, %v105_v20 }
  0xe4   :  { %442 = vmatmul.mubr.bf16.vlgmr.msra.gmra.mrb[0].mxu1 %v106_v22 }
 0x1b7   :  { %v211_v26 = vpop.f32.mrb[0].mxu1 }
 0x1b8   :  { %v212_v27 = vadd.f32 %v378_v25, %v211_v26  ;;  %v443_v28 = vpop.f32.mrb[1].mxu1 }
 0x1b9   :  { %v214_v29 = vpop.f32.mrb[2].mxu1 }
 0x1ba   :  { %v217_v30 = vmax.f32 %v212_v27, 0.0  ;;  %v444_v31 = vpop.f32.mrb[3].mxu1 }
 0x1bc   :  { %v218_v33 = vpack.c.bf16 %v217_v30, %v217_v30 }
 0x1be   :  { %454 = vmatmul.mubr.msk.bf16.vlgmr.msra.gmra.mrb[4].mxu0 %vm257_vm2, %v218_v33 }
 0x1bf   :  { %458 = vmatpush3.bf16.msra.mxu0 %v481_v32  ;;  %461 = vmatprep.mubr.msk.bf16.mxu0 %vm484_vm0, %v483_v0 }
 0x1c0   :  { %459 = vmatprep.subr.bf16.mxu0 %v483_v0 }
 0x1c3   :  { %460 = vmatpush3.bf16.msra.mxu0 %v482_v34 }
 0x291   :  { %v295_v36 = vpop.f32.mrb[4].mxu0 }
 0x292   :  { %v296_v37 = vadd.f32 %v387_v35, %v295_v36  ;;  %v455_v38 = vpop.f32.mrb[5].mxu0 }
 0x293   :  { %v298_v39 = vpop.f32.mrb[6].mxu0 }
 0x294   :  { %v301_v40 = vmax.f32 %v296_v37, 0.0  ;;  %v456_v41 = vpop.f32.mrb[7].mxu0 }
 0x296   :  { %v302_v42 = vpack.c.bf16 %v301_v40, %v301_v40 }
 0x298   :  { %462 = vmatmul.mubr.msk.bf16.vlgmr.msra.gmra.mrb[8].mxu0 %vm61_vm1, %v302_v42 }
 0x36b   :  { %v362_v44 = vpop.f32.mrb[8].mxu0 }
 0x36c   :  { %v363_v45 = vadd.f32 %v393_v43, %v362_v44  ;;  %v463_v46 = vpop.f32.mrb[9].mxu0 }
 0x36d   :  { %v365_v47 = vpop.f32.mrb[10].mxu0 }
 0x36e   :  { %369 = vst.msk [vmem:[%s636_s9] sm:$0xff] %vm368_vm3, %v363_v45  ;;  %v464_v48 = vpop.f32.mrb[11].mxu0 }

</bundles_post_ra>
